<compile_context>
chip_gen: v7x
topology: tpu7x:2x2x1
jax: 0.10.0
libtpu: 0.0.40
codegen_flags: <defaults>
</compile_context>

<pallas_src>
import jax
import jax.numpy as jnp
from jax.experimental import pallas as pl
from jax.experimental.pallas import tpu as pltpu


def _round_up(x, m):
    return (x + m - 1) // m * m


def _cdiv(a, b):
    return -(-a // b)


def _device_caps():
    """VMEM budgets per TPU generation (v7x has 64 MiB VMEM, v5e/v6e 128)."""
    try:
        kind = jax.devices()[0].device_kind.lower()
    except Exception:  # pragma: no cover
        kind = ""
    if "v5" in kind or "v6" in kind:
        # 128 MiB parts: bigger tiles amortize the ~0.35us per-grid-step cost.
        return {"vmem_budget": 32 << 20, "vmem_limit": 96 << 20, "tb_cap": 1024}
    # v7x (64 MiB VMEM) and unknown chips: stay conservative.
    return {"vmem_budget": 16 << 20, "vmem_limit": 48 << 20, "tb_cap": 512}


def _choose_batch_tile(batch2, dim, itemsize, *, fused, vmem_budget_bytes,
                       tb_cap):
    """Largest batch tile whose VMEM working set fits the budget, accounting
    for lane padding (rows occupy round_up(.,128) lanes) and the (tb, 1)
    output blocks that pad to (tb, 128) f32 in VMEM."""
    gran = 16 if itemsize < 4 else 8          # bf16 sublane packing
    row_elems = 2 * _round_up(dim, 128) + _round_up(2 * dim, 128)
    bufs = 1 if fused else 2                  # fused path: single-buffer scratch
    per_row = bufs * row_elems * itemsize + 2 * 128 * 4
    tb = max(gran, (vmem_budget_bytes // per_row) // gran * gran)
    if fused:
        tb_cap = min(tb_cap, 256)             # bound outstanding per-row DMAs
    tb = min(tb, tb_cap, _round_up(batch2, gran))
    # Keep >= 2 grid steps when the batch allows it so both v7x TensorCores
    # get work under dimension_semantics=("parallel",).
    if batch2 >= 2 * gran:
        tb = min(tb, max(gran, _round_up(_cdiv(batch2, 2), gran)))
    return tb


# --------------------------------------------------------------------------
# Kernels
# --------------------------------------------------------------------------
def _transh_elem_kernel(h_ref, r_ref, t_ref, out_ref):
    """Small-D fallback: embeddings already gathered by XLA. r_ref holds the
    (tb, 2D) relation rows; the D-split stays in-kernel (D < 128 here, so both
    halves share a lane tile anyway -- perf-only concern)."""
    D = h_ref.shape[-1]
    h = h_ref[...].astype(jnp.float32)
    t = t_ref[...].astype(jnp.float32)
    r0 = r_ref[:, :D].astype(jnp.float32)
    r1 = r_ref[:, D:].astype(jnp.float32)
    diff = (h + r0) - (t - r1)
    out_ref[...] = jnp.sqrt(jnp.sum(diff * diff, axis=-1, keepdims=True))


def _transh_fused_kernel(h_idx, r_idx, t_idx, ent_ref, rel_ref, out_ref,
                         hbuf, rbuf, tbuf, sems):
    """Gather-fused path: per-row DMA gather from the HBM-resident embedding
    tables into VMEM scratch, then projection + L2 norm (f32 accumulate)."""
    tb, D = hbuf.shape
    base = pl.program_id(0) * tb

    @pl.loop(0, tb)
    def _issue(r):
        pltpu.make_async_copy(ent_ref.at[pl.ds(h_idx[base + r], 1)],
                              hbuf.at[pl.ds(r, 1)], sems.at[0]).start()
        pltpu.make_async_copy(rel_ref.at[pl.ds(r_idx[base + r], 1)],
                              rbuf.at[pl.ds(r, 1)], sems.at[1]).start()
        pltpu.make_async_copy(ent_ref.at[pl.ds(t_idx[base + r], 1)],
                              tbuf.at[pl.ds(r, 1)], sems.at[2]).start()

    @pl.loop(0, tb)
    def _drain(r):
        pltpu.make_async_copy(ent_ref.at[pl.ds(0, 1)],
                              hbuf.at[pl.ds(r, 1)], sems.at[0]).wait()
        pltpu.make_async_copy(rel_ref.at[pl.ds(0, 1)],
                              rbuf.at[pl.ds(r, 1)], sems.at[1]).wait()
        pltpu.make_async_copy(ent_ref.at[pl.ds(0, 1)],
                              tbuf.at[pl.ds(r, 1)], sems.at[2]).wait()

    h = hbuf[...].astype(jnp.float32)
    t = tbuf[...].astype(jnp.float32)
    r0 = rbuf[:, :D].astype(jnp.float32)   # D % 128 == 0 -> lane-aligned split
    r1 = rbuf[:, D:].astype(jnp.float32)
    diff = (h + r0) - (t - r1)
    out_ref[...] = jnp.sqrt(jnp.sum(diff * diff, axis=-1, keepdims=True))


# --------------------------------------------------------------------------
# pallas_call wrappers
# --------------------------------------------------------------------------
def transh_distances_gathered(h_emb, r_emb, t_emb, *, batch_tile, vmem_limit):
    """Fallback path: embeddings pre-gathered, shapes (B2, D)/(B2, 2D)."""
    B2, D = h_emb.shape
    tb = batch_tile
    assert B2 % tb == 0
    n_tiles = B2 // tb
    ent_spec = pl.BlockSpec((tb, D), lambda i: (i, 0))
    rel_spec = pl.BlockSpec((tb, 2 * D), lambda i: (i, 0))
    out_spec = pl.BlockSpec((tb, 1), lambda i: (i, 0))
    dist = pl.pallas_call(
        _transh_elem_kernel,
        out_shape=jax.ShapeDtypeStruct((B2, 1), jnp.float32),
        grid=(n_tiles,),
        in_specs=[ent_spec, rel_spec, ent_spec],
        out_specs=out_spec,
        compiler_params=pltpu.CompilerParams(
            dimension_semantics=("parallel",),
            vmem_limit_bytes=vmem_limit),
    )(h_emb, r_emb, t_emb)
    return dist[:, 0]


def transh_distances_fused(h_idx, r_idx, t_idx, ent_table, rel_table, *,
                           batch_tile, vmem_limit):
    """Gather-fused path: indices (B2,) int32, tables stay in HBM."""
    B2 = h_idx.shape[0]
    D = ent_table.shape[1]
    tb = batch_tile
    assert B2 % tb == 0 and D % 128 == 0
    n_tiles = B2 // tb
    table_dtype = ent_table.dtype

    grid_spec = pltpu.PrefetchScalarGridSpec(
        num_scalar_prefetch=3,
        grid=(n_tiles,),
        in_specs=[pl.BlockSpec(memory_space=pl.ANY),     # entity table (HBM)
                  pl.BlockSpec(memory_space=pl.ANY)],    # relation table (HBM)
        out_specs=pl.BlockSpec((tb, 1), lambda i, hi, ri, ti: (i, 0)),
        scratch_shapes=[pltpu.VMEM((tb, D), table_dtype),       # hbuf
                        pltpu.VMEM((tb, 2 * D), table_dtype),   # rbuf
                        pltpu.VMEM((tb, D), table_dtype),       # tbuf
                        pltpu.SemaphoreType.DMA((3,))])

    dist = pl.pallas_call(
        _transh_fused_kernel,
        out_shape=jax.ShapeDtypeStruct((B2, 1), jnp.float32),
        grid_spec=grid_spec,
        compiler_params=pltpu.CompilerParams(
            dimension_semantics=("parallel",),
            vmem_limit_bytes=vmem_limit),
    )(h_idx, r_idx, t_idx, ent_table, rel_table)
    return dist[:, 0]


# --------------------------------------------------------------------------
# Module
# --------------------------------------------------------------------------
class TransHPallas:
    """JAX/Pallas port of the PyTorch TransH module's forward pass."""

    def __init__(self, num_entities, num_relations, embedding_dim, key,
                 table_dtype=jnp.float32):
        self.embedding_dim = embedding_dim
        self.table_dtype = jnp.dtype(table_dtype)
        k1, k2 = jax.random.split(key)
        # nn.init.xavier_uniform_: bound = sqrt(6 / (fan_in + fan_out)).
        b_e = (6.0 / (num_entities + embedding_dim)) ** 0.5
        b_r = (6.0 / (num_relations + 2 * embedding_dim)) ** 0.5
        self.entity_embeddings = jax.random.uniform(
            k1, (num_entities, embedding_dim), jnp.float32, -b_e, b_e
        ).astype(self.table_dtype)
        self.relation_embeddings = jax.random.uniform(
            k2, (num_relations, 2 * embedding_dim), jnp.float32, -b_r, b_r
        ).astype(self.table_dtype)

    def __call__(self, positive_sample, negative_sample):
        pos_h, pos_r, pos_t = positive_sample
        neg_h, neg_r, neg_t = negative_sample
        D = self.embedding_dim
        B = pos_h.shape[0]
        B2 = 2 * B

        # Merge positive and negative triples into one batch: one gather per
        # role, one kernel launch, half the DMA descriptors.
        h_idx = jnp.concatenate([pos_h, neg_h]).astype(jnp.int32)
        r_idx = jnp.concatenate([pos_r, neg_r]).astype(jnp.int32)
        t_idx = jnp.concatenate([pos_t, neg_t]).astype(jnp.int32)

        caps = _device_caps()
        itemsize = self.table_dtype.itemsize
        use_fused = (D % 128 == 0)
        tb = _choose_batch_tile(B2, D, itemsize, fused=use_fused,
                                vmem_budget_bytes=caps["vmem_budget"],
                                tb_cap=caps["tb_cap"])
        b2_pad = _round_up(B2, tb)

        def pad_idx(idx):
            # Pad indices (not embeddings) with 0 (a valid row); padded rows
            # are sliced away below, so no extra HBM traffic from padding.
            return idx if b2_pad == B2 else jnp.pad(idx, (0, b2_pad - B2))

        h_idx, r_idx, t_idx = pad_idx(h_idx), pad_idx(r_idx), pad_idx(t_idx)

        if use_fused:
            dist = transh_distances_fused(
                h_idx, r_idx, t_idx,
                self.entity_embeddings, self.relation_embeddings,
                batch_tile=tb, vmem_limit=caps["vmem_limit"])
        else:
            # Small-D fallback: keep the nn.Embedding gather in XLA.
            h_emb = self.entity_embeddings[h_idx]
            r_emb = self.relation_embeddings[r_idx]
            t_emb = self.entity_embeddings[t_idx]
            dist = transh_distances_gathered(
                h_emb, r_emb, t_emb,
                batch_tile=tb, vmem_limit=caps["vmem_limit"])

        dist = dist[:B2]
        return dist[:B], dist[B:]


# --------------------------------------------------------------------------
# Reference + demo
# --------------------------------------------------------------------------
def _reference(model, positive_sample, negative_sample):
    pos_h, pos_r, pos_t = positive_sample
    neg_h, neg_r, neg_t = negative_sample
    D = model.embedding_dim
    ent = model.entity_embeddings.astype(jnp.float32)
    rel = model.relation_embeddings.astype(jnp.float32)
    ph, pt = ent[pos_h], ent[pos_t]
    nh, nt = ent[neg_h], ent[neg_t]
    pr = rel[pos_r].reshape(-1, 2, D)
    nr = rel[neg_r].reshape(-1, 2, D)
    pos_dist = jnp.linalg.norm((ph + pr[:, 0]) - (pt - pr[:, 1]), axis=1)
    neg_dist = jnp.linalg.norm((nh + nr[:, 0]) - (nt - nr[:, 1]), axis=1)
    return pos_dist, neg_dist


if __name__ == "__main__":
    num_entities, num_relations, batch = 64, 16, 8
    key = jax.random.PRNGKey(0)

    # (embedding_dim, table_dtype, tol):
    #   D=128 f32  -> gather-fused path
    #   D=32  f32  -> XLA-gather fallback path (small D)
    #   D=128 bf16 -> bf16 streaming (f32 accumulate), gated by table_dtype
    configs = [
        (128, jnp.float32, 1e-5),
        (32, jnp.float32, 1e-5),
        (128, jnp.bfloat16, 1e-3),
    ]

    for embedding_dim, table_dtype, tol in configs:
        key, k_model, k_ph, k_pr, k_pt, k_nh, k_nr, k_nt = jax.random.split(
            key, 8)
        model = TransHPallas(num_entities, num_relations, embedding_dim,
                             k_model, table_dtype=table_dtype)

        pos_h = jax.random.randint(k_ph, (batch,), 0, num_entities)
        pos_r = jax.random.randint(k_pr, (batch,), 0, num_relations)
        pos_t = jax.random.randint(k_pt, (batch,), 0, num_entities)
        neg_h = jax.random.randint(k_nh, (batch,), 0, num_entities)
        neg_r = jax.random.randint(k_nr, (batch,), 0, num_relations)
        neg_t = jax.random.randint(k_nt, (batch,), 0, num_entities)

        pos_dist, neg_dist = model((pos_h, pos_r, pos_t),
                                   (neg_h, neg_r, neg_t))
        jax.block_until_ready((pos_dist, neg_dist))

        ref_pos, ref_neg = _reference(model, (pos_h, pos_r, pos_t),
                                      (neg_h, neg_r, neg_t))
        assert pos_dist.shape == (batch,) and neg_dist.shape == (batch,)
        assert jnp.allclose(pos_dist, ref_pos, atol=tol, rtol=tol), (
            embedding_dim, str(table_dtype))
        assert jnp.allclose(neg_dist, ref_neg, atol=tol, rtol=tol), (
            embedding_dim, str(table_dtype))

    print("KERNEL_OK")
</pallas_src>

<mosaic_0001>
module attributes {stable_mosaic.version = 11 : i64} {
  func.func @_transh_fused_kernel(%arg0: i32, %arg1: memref<16xi32, #tpu.memory_space<smem>>, %arg2: memref<16xi32, #tpu.memory_space<smem>>, %arg3: memref<16xi32, #tpu.memory_space<smem>>, %arg4: memref<64x128xf32, #tpu.memory_space<any>>, %arg5: memref<16x256xf32, #tpu.memory_space<any>>, %arg6: memref<8x1xf32, #tpu.memory_space<vmem>>, %arg7: memref<8x128xf32, #tpu.memory_space<vmem>>, %arg8: memref<8x256xf32, #tpu.memory_space<vmem>>, %arg9: memref<8x128xf32, #tpu.memory_space<vmem>>, %arg10: memref<3x!tpu.dma_semaphore, #tpu.memory_space<semaphore_mem>>) attributes {dimension_semantics = [#tpu.dimension_semantics<parallel>], iteration_bounds = array<i64: 2>, scalar_prefetch = 3 : i64, scratch_operands = 4 : i64, tpu.core_type = #tpu.core_type<tc>, window_params = [{}, {}, {transform_indices = @transform_2, window_bounds = array<i64: 8, 1>}]} {
    %c8_i32 = arith.constant 8 : i32
    %0 = arith.muli %arg0, %c8_i32 : i32
    %c0_i32 = arith.constant 0 : i32
    %c8_i32_0 = arith.constant 8 : i32
    %1 = arith.addi %c0_i32, %c8_i32_0 : i32
    %c1_i32 = arith.constant 1 : i32
    scf.for %arg11 = %c0_i32 to %1 step %c1_i32  : i32 {
      %c1_i32_14 = arith.constant 1 : i32
      %15 = arith.muli %arg11, %c1_i32_14 : i32
      %c0_i32_15 = arith.constant 0 : i32
      %16 = arith.addi %c0_i32_15, %15 : i32
      %17 = arith.addi %0, %16 : i32
      %18 = arith.index_cast %17 : i32 to index
      %19 = memref.load %arg1[%18] : memref<16xi32, #tpu.memory_space<smem>>
      %c0_i32_16 = arith.constant 0 : i32
      %c0_i32_17 = arith.constant 0 : i32
      %20 = tpu.memref_slice %arg4[%19, %c0_i32_17] : memref<64x128xf32, #tpu.memory_space<any>> -> memref<1x128xf32, #tpu.memory_space<any>>
      %c0_i32_18 = arith.constant 0 : i32
      %21 = tpu.memref_slice %arg7[%16, %c0_i32_18] : memref<8x128xf32, #tpu.memory_space<vmem>> -> memref<1x128xf32, #tpu.memory_space<vmem>>
      %22 = tpu.memref_slice %arg10[%c0_i32_16] : memref<3x!tpu.dma_semaphore, #tpu.memory_space<semaphore_mem>> -> memref<1x!tpu.dma_semaphore, #tpu.memory_space<semaphore_mem>>
      %23 = tpu.memref_squeeze %22 : memref<1x!tpu.dma_semaphore, #tpu.memory_space<semaphore_mem>> -> memref<!tpu.dma_semaphore, #tpu.memory_space<semaphore_mem>>
      tpu.enqueue_dma source(%20 : memref<1x128xf32, #tpu.memory_space<any>>) target(%21 : memref<1x128xf32, #tpu.memory_space<vmem>>) target_semaphore(%23 : memref<!tpu.dma_semaphore, #tpu.memory_space<semaphore_mem>>)
      %24 = arith.addi %0, %16 : i32
      %25 = arith.index_cast %24 : i32 to index
      %26 = memref.load %arg2[%25] : memref<16xi32, #tpu.memory_space<smem>>
      %c1_i32_19 = arith.constant 1 : i32
      %c0_i32_20 = arith.constant 0 : i32
      %27 = tpu.memref_slice %arg5[%26, %c0_i32_20] : memref<16x256xf32, #tpu.memory_space<any>> -> memref<1x256xf32, #tpu.memory_space<any>>
      %c0_i32_21 = arith.constant 0 : i32
      %28 = tpu.memref_slice %arg8[%16, %c0_i32_21] : memref<8x256xf32, #tpu.memory_space<vmem>> -> memref<1x256xf32, #tpu.memory_space<vmem>>
      %29 = tpu.memref_slice %arg10[%c1_i32_19] : memref<3x!tpu.dma_semaphore, #tpu.memory_space<semaphore_mem>> -> memref<1x!tpu.dma_semaphore, #tpu.memory_space<semaphore_mem>>
      %30 = tpu.memref_squeeze %29 : memref<1x!tpu.dma_semaphore, #tpu.memory_space<semaphore_mem>> -> memref<!tpu.dma_semaphore, #tpu.memory_space<semaphore_mem>>
      tpu.enqueue_dma source(%27 : memref<1x256xf32, #tpu.memory_space<any>>) target(%28 : memref<1x256xf32, #tpu.memory_space<vmem>>) target_semaphore(%30 : memref<!tpu.dma_semaphore, #tpu.memory_space<semaphore_mem>>)
      %31 = arith.addi %0, %16 : i32
      %32 = arith.index_cast %31 : i32 to index
      %33 = memref.load %arg3[%32] : memref<16xi32, #tpu.memory_space<smem>>
      %c2_i32 = arith.constant 2 : i32
      %c0_i32_22 = arith.constant 0 : i32
      %34 = tpu.memref_slice %arg4[%33, %c0_i32_22] : memref<64x128xf32, #tpu.memory_space<any>> -> memref<1x128xf32, #tpu.memory_space<any>>
      %c0_i32_23 = arith.constant 0 : i32
      %35 = tpu.memref_slice %arg9[%16, %c0_i32_23] : memref<8x128xf32, #tpu.memory_space<vmem>> -> memref<1x128xf32, #tpu.memory_space<vmem>>
      %36 = tpu.memref_slice %arg10[%c2_i32] : memref<3x!tpu.dma_semaphore, #tpu.memory_space<semaphore_mem>> -> memref<1x!tpu.dma_semaphore, #tpu.memory_space<semaphore_mem>>
      %37 = tpu.memref_squeeze %36 : memref<1x!tpu.dma_semaphore, #tpu.memory_space<semaphore_mem>> -> memref<!tpu.dma_semaphore, #tpu.memory_space<semaphore_mem>>
      tpu.enqueue_dma source(%34 : memref<1x128xf32, #tpu.memory_space<any>>) target(%35 : memref<1x128xf32, #tpu.memory_space<vmem>>) target_semaphore(%37 : memref<!tpu.dma_semaphore, #tpu.memory_space<semaphore_mem>>)
    }
    %c8_i32_1 = arith.constant 8 : i32
    %c0_i32_2 = arith.constant 0 : i32
    %c8_i32_3 = arith.constant 8 : i32
    %2 = arith.addi %c0_i32_2, %c8_i32_3 : i32
    %c1_i32_4 = arith.constant 1 : i32
    scf.for %arg11 = %c0_i32_2 to %2 step %c1_i32_4  : i32 {
      %c1_i32_14 = arith.constant 1 : i32
      %15 = arith.muli %arg11, %c1_i32_14 : i32
      %c0_i32_15 = arith.constant 0 : i32
      %16 = arith.addi %c0_i32_15, %15 : i32
      %c0_i32_16 = arith.constant 0 : i32
      %c0_i32_17 = arith.constant 0 : i32
      %c0_i32_18 = arith.constant 0 : i32
      %17 = tpu.memref_slice %arg4[%c0_i32_17, %c0_i32_18] : memref<64x128xf32, #tpu.memory_space<any>> -> memref<1x128xf32, #tpu.memory_space<any>>
      %c0_i32_19 = arith.constant 0 : i32
      %18 = tpu.memref_slice %arg7[%16, %c0_i32_19] : memref<8x128xf32, #tpu.memory_space<vmem>> -> memref<1x128xf32, #tpu.memory_space<vmem>>
      %19 = tpu.memref_slice %arg10[%c0_i32_16] : memref<3x!tpu.dma_semaphore, #tpu.memory_space<semaphore_mem>> -> memref<1x!tpu.dma_semaphore, #tpu.memory_space<semaphore_mem>>
      %20 = tpu.memref_squeeze %19 : memref<1x!tpu.dma_semaphore, #tpu.memory_space<semaphore_mem>> -> memref<!tpu.dma_semaphore, #tpu.memory_space<semaphore_mem>>
      tpu.wait_dma2 semaphore(%20 : memref<!tpu.dma_semaphore, #tpu.memory_space<semaphore_mem>>) src(%17 : memref<1x128xf32, #tpu.memory_space<any>>) dst(%18 : memref<1x128xf32, #tpu.memory_space<vmem>>)
      %c1_i32_20 = arith.constant 1 : i32
      %c0_i32_21 = arith.constant 0 : i32
      %c0_i32_22 = arith.constant 0 : i32
      %21 = tpu.memref_slice %arg5[%c0_i32_21, %c0_i32_22] : memref<16x256xf32, #tpu.memory_space<any>> -> memref<1x256xf32, #tpu.memory_space<any>>
      %c0_i32_23 = arith.constant 0 : i32
      %22 = tpu.memref_slice %arg8[%16, %c0_i32_23] : memref<8x256xf32, #tpu.memory_space<vmem>> -> memref<1x256xf32, #tpu.memory_space<vmem>>
      %23 = tpu.memref_slice %arg10[%c1_i32_20] : memref<3x!tpu.dma_semaphore, #tpu.memory_space<semaphore_mem>> -> memref<1x!tpu.dma_semaphore, #tpu.memory_space<semaphore_mem>>
      %24 = tpu.memref_squeeze %23 : memref<1x!tpu.dma_semaphore, #tpu.memory_space<semaphore_mem>> -> memref<!tpu.dma_semaphore, #tpu.memory_space<semaphore_mem>>
      tpu.wait_dma2 semaphore(%24 : memref<!tpu.dma_semaphore, #tpu.memory_space<semaphore_mem>>) src(%21 : memref<1x256xf32, #tpu.memory_space<any>>) dst(%22 : memref<1x256xf32, #tpu.memory_space<vmem>>)
      %c2_i32 = arith.constant 2 : i32
      %c0_i32_24 = arith.constant 0 : i32
      %c0_i32_25 = arith.constant 0 : i32
      %25 = tpu.memref_slice %arg4[%c0_i32_24, %c0_i32_25] : memref<64x128xf32, #tpu.memory_space<any>> -> memref<1x128xf32, #tpu.memory_space<any>>
      %c0_i32_26 = arith.constant 0 : i32
      %26 = tpu.memref_slice %arg9[%16, %c0_i32_26] : memref<8x128xf32, #tpu.memory_space<vmem>> -> memref<1x128xf32, #tpu.memory_space<vmem>>
      %27 = tpu.memref_slice %arg10[%c2_i32] : memref<3x!tpu.dma_semaphore, #tpu.memory_space<semaphore_mem>> -> memref<1x!tpu.dma_semaphore, #tpu.memory_space<semaphore_mem>>
      %28 = tpu.memref_squeeze %27 : memref<1x!tpu.dma_semaphore, #tpu.memory_space<semaphore_mem>> -> memref<!tpu.dma_semaphore, #tpu.memory_space<semaphore_mem>>
      tpu.wait_dma2 semaphore(%28 : memref<!tpu.dma_semaphore, #tpu.memory_space<semaphore_mem>>) src(%25 : memref<1x128xf32, #tpu.memory_space<any>>) dst(%26 : memref<1x128xf32, #tpu.memory_space<vmem>>)
    }
    %c8_i32_5 = arith.constant 8 : i32
    %c0 = arith.constant 0 : index
    %c0_6 = arith.constant 0 : index
    %3 = vector.load %arg7[%c0, %c0_6] : memref<8x128xf32, #tpu.memory_space<vmem>>, vector<8x128xf32>
    %c0_7 = arith.constant 0 : index
    %c0_8 = arith.constant 0 : index
    %4 = vector.load %arg9[%c0_7, %c0_8] : memref<8x128xf32, #tpu.memory_space<vmem>>, vector<8x128xf32>
    %c0_9 = arith.constant 0 : index
    %c0_10 = arith.constant 0 : index
    %5 = vector.load %arg8[%c0_9, %c0_10] : memref<8x256xf32, #tpu.memory_space<vmem>>, vector<8x128xf32>
    %c0_11 = arith.constant 0 : index
    %c128 = arith.constant 128 : index
    %6 = vector.load %arg8[%c0_11, %c128] : memref<8x256xf32, #tpu.memory_space<vmem>>, vector<8x128xf32>
    %7 = arith.addf %3, %5 : vector<8x128xf32>
    %8 = arith.subf %4, %6 : vector<8x128xf32>
    %9 = arith.subf %7, %8 : vector<8x128xf32>
    %10 = arith.mulf %9, %9 : vector<8x128xf32>
    %cst = arith.constant dense<0.000000e+00> : vector<8xf32>
    %11 = vector.multi_reduction <add>, %10, %cst [1] : vector<8x128xf32> to vector<8xf32>
    %12 = vector.shape_cast %11 : vector<8xf32> to vector<8x1xf32>
    %13 = math.sqrt %12 : vector<8x1xf32>
    %c0_12 = arith.constant 0 : index
    %c0_13 = arith.constant 0 : index
    %14 = vector.load %arg6[%c0_12, %c0_13] : memref<8x1xf32, #tpu.memory_space<vmem>>, vector<8x1xf32>
    tpu.vector_store %arg6[%c0_12, %c0_13], %13 {strides = array<i32>} : memref<8x1xf32, #tpu.memory_space<vmem>>, vector<8x1xf32>,
    return
  }
  func.func @transform_2(%arg0: i32, %arg1: memref<16xi32, #tpu.memory_space<smem>>, %arg2: memref<16xi32, #tpu.memory_space<smem>>, %arg3: memref<16xi32, #tpu.memory_space<smem>>) -> (i32, i32) {
    %c0_i32 = arith.constant 0 : i32
    %c0_i32_0 = arith.constant 0 : i32
    return %arg0, %c0_i32 : i32, i32
  }
}

</mosaic_0001>

<bundles_post_ra>
// kernel: tpu_custom_call.1
= control target key start
LH: loop header
LB: loop body
LE: loop exit
PB: predicated region body
PF: predicated region fallthrough
CT: control target
= control target key end

     0   :  { %s569_s0 = inlined_call_operand.hbm [shape: s32[16], index: 0, kind: input, shape index: {}]   ;;  %s570_s3 = inlined_call_operand.hbm [shape: f32[64,128], index: 3, kind: input, shape index: {}]   ;;  %s571_s4 = inlined_call_operand.hbm [shape: f32[16,256], index: 4, kind: input, shape index: {}]   ;;  %s572_s5 = inlined_call_operand.vmem [shape: f32[16,1], index: 5, kind: output, shape index: {}]   ;;  %s573_s1 = inlined_call_operand.vmem [shape: s32[16], index: 1, kind: input, shape index: {}]   ;;  %s574_s2 = inlined_call_operand.vmem [shape: s32[16], index: 2, kind: input, shape index: {}]  }
   0x1   :  { %s281_s20 = scalar_lea.hbm %s569_s0, 16 }
   0x2   :  { %p282_p0 = scmp.ne.s32.totalorder %s569_s0, %s281_s20  ;;  %p285_p1 = scmp.lt.u32.totalorder %s281_s20, %s569_s0 }
   0x4   :  { %p287_p2 = pnand %p285_p1, %p282_p0 }
   0x6   :  { %290 = shalt.err (!%p287_p2)  }
   0x7   :  { %s419_s25 = smov [#allocation7]   ;;  %s12_s30 = sshll.u32 %s573_s1, 4  ;;  %s13_s30 = int_to_ptr.vmem [resolvable:$true] %s12_s30 }
   0x8   :  { %11 = dma.hbm_to_smem %s569_s0, 16, %s419_s25, [#allocation6] }
   0x9   :  { %s16_s8 = sshll.u32 %s574_s2, 4  ;;  %s291_s9 = scalar_lea.vmem %s13_s30, 16  ;;  %s17_s8 = int_to_ptr.vmem [resolvable:$true] %s16_s8 }
   0xa   :  { %p292_p3 = scmp.ne.s32.totalorder %s13_s30, %s291_s9  ;;  %p296_p4 = scmp.lt.s32.totalorder %s13_s30, %s13_s30 }
   0xb   :  { %p297_p5 = scmp.lt.s32.totalorder %s291_s9, %s291_s9 }
   0xd   :  { %p298_p6 = por %p297_p5, %p296_p4 }
   0xf   :  { %p299_p7 = pnand %p298_p6, %p292_p3 }
  0x11   :  { %302 = shalt.err (!%p299_p7)  }
  0x12   :  { %s420_s10 = smov [#allocation8]   ;;  %s303_s0 = scalar_lea.vmem %s17_s8, 16 }
  0x13   :  { %15 = dma.vmem_to_smem %s13_s30, 16, %s420_s10, [#allocation6] }
  0x14   :  { %p304_p8 = scmp.ne.s32.totalorder %s17_s8, %s303_s0  ;;  %p308_p9 = scmp.lt.s32.totalorder %s17_s8, %s17_s8 }
  0x15   :  { %p309_p10 = scmp.lt.s32.totalorder %s303_s0, %s303_s0 }
  0x17   :  { %p310_p11 = por %p309_p10, %p308_p9 }
  0x19   :  { %p311_p12 = pnand %p310_p11, %p304_p8 }
  0x1b   :  { %314 = shalt.err (!%p311_p12)  }
  0x1c   :  { %s421_s1 = smov [#allocation9]  }
  0x1d   :  { %19 = dma.vmem_to_smem %s17_s8, 16, %s421_s1, [#allocation6] }
  0x1e   :  { %399 = dma.done.wait [#allocation6], 48 }
  0x1f   :  { %400 = vsyncadd [#allocation6], 4294967248 }
  0x20   :  { %21 = sfence }
  0x21   :  { %s475_s2 = smov 0  }
  0x22 LB: > { %p237_p13 = scmp.ge.s32.totalorder %s409_s2, 2  ;;  %s409_s2 = sphi %s475_s2, %s27_s2  }
  0x23   : > { %p59_p0 = scmp.lt.s32.totalorder (!%p237_p13), %s409_s2, 1  ;;  %s239_s11 = sshll.u32 (!%p237_p13), %s409_s2, 3 }
  0x24   : > { %52 = sbr.rel (%p237_p13) target bundleno = 307 (0x133), region = 12  ;;  %s489_s17 = smov (!%p237_p13), 0  }
  0x2b   : > { %s60_s12 = scalar_select %p59_p0, %s409_s2, 1 }
  0x2d   : > { %s238_s13 = sshll.u32 %s60_s12, 3 }
  0x2e   : > { %s487_s16 = scalar_lea.vmem %s572_s5, %s238_s13 }
  0x2f LB: >> { %s70_s18 = sadd.s32 %s413_s17, %s239_s11  ;;  %s74_s20 = scalar_lea.vmem [#allocation2], %s413_s17  ;;  %s413_s17 = sphi %s489_s17, %s69_s17  }
  0x30   : >> { %s71_s19 = sld [smem:[#allocation7 + %s70_s18]]  ;;  %s82_s21 = sshll.u32 %s74_s20, 4  ;;  %s498_s21 = int_to_ptr.vmem [resolvable:$true] %s82_s21 }
  0x31   : >> { %s500_s22 = sld [smem:[#allocation8 + %s70_s18]]  ;;  %s93_s23 = sshrl.u32 %s413_s17, 3 }
  0x32   : >> { %s94_s24 = sand.u32 7, %s413_s17   ;;  %s243_s25 = sshll.u32 %s93_s23, 4 }
  0x33   : >> { %s504_s26 = sld [smem:[#allocation9 + %s70_s18]]  ;;  %s96_s27 = sadd.s32 %s243_s25, %s94_s24 }
  0x34   : >> { %s107_s28 = scalar_lea.vmem [#allocation4], %s413_s17  ;;  %s97_s6 = scalar_lea.vmem [#allocation3], %s96_s27 }
  0x35   : >> { %s507_s29 = sshll.u32 %s107_s28, 4  ;;  %s100_s7 = sshll.u32 %s97_s6, 4  ;;  %s528_s7 = int_to_ptr.vmem [resolvable:$true] %s100_s7  ;;  %s117_s29 = int_to_ptr.vmem [resolvable:$true] %s507_s29 }
  0x36   : >> { %s240_s30 = sshll.u32 %s71_s19, 4  ;;  %s317_s14 = scalar_lea.hbm %s570_s3, 1024 }
  0x37   : >> { %s73_s10 = scalar_lea.hbm %s570_s3, %s240_s30  ;;  %s87_s0 = sshrl.u32 %s500_s22, 3 }
  0x38   : >> { %s315_s1 = scalar_lea.hbm %s73_s10, 16  ;;  %p318_p2 = scmp.lt.u32.totalorder %s73_s10, %s570_s3 }
  0x39   : >> { %p316_p1 = scmp.ne.s32.totalorder %s73_s10, %s315_s1  ;;  %p319_p3 = scmp.lt.u32.totalorder %s317_s14, %s315_s1 }
  0x3a   : >> { %p321_p5 = scmp.lt.u32.totalorder %s315_s1, %s73_s10 }
  0x3b   : >> { %p320_p4 = por %p319_p3, %p318_p2 }
  0x3d   : >> { %p322_p6 = por %p321_p5, %p320_p4 }
  0x3f   : >> { %p323_p7 = pnand %p322_p6, %p316_p1 }
  0x41   : >> { %326 = shalt.err (!%p323_p7)  }
  0x42   : >> { %s327_s19 = scalar_lea.vmem %s498_s21, 16  ;;  %s422_s24 = smov [#allocation2]  }
  0x43   : >> { %p328_p8 = scmp.ne.s32.totalorder %s498_s21, %s327_s19  ;;  %s329_s25 = sshll.u32 %s422_s24, 4  ;;  %s330_s25 = int_to_ptr.vmem [resolvable:$false] %s329_s25 }
  0x44   : >> { %s331_s27 = scalar_lea.vmem %s330_s25, 128  ;;  %p332_p9 = scmp.lt.s32.totalorder %s498_s21, %s330_s25 }
  0x45   : >> { %p333_p10 = scmp.lt.s32.totalorder %s331_s27, %s327_s19 }
  0x47   : >> { %p334_p11 = por %p333_p10, %p332_p9 }
  0x49   : >> { %p335_p12 = pnand %p334_p11, %p328_p8 }
  0x4b   : >> { %338 = shalt.err (!%p335_p12)  }
  0x4c   : >> { %85 = dma.hbm_to_vmem [thread:$0]  %s73_s10, 16, %s498_s21, [#allocation5] }
  0x4d   : >> { %s88_s28 = sand.u32 7, %s500_s22   ;;  %s241_s30 = sshll.u32 %s87_s0, 4 }
  0x4e   : >> { %s90_s6 = sadd.s32 %s241_s30, %s88_s28  ;;  %s244_s9 = sshll.u32 %s504_s26, 4 }
  0x4f   : >> { %s242_s8 = sshll.u32 %s90_s6, 4  ;;  %s537_s20 = scalar_lea.hbm %s570_s3, %s244_s9 }
  0x50   : >> { %s92_s13 = scalar_lea.hbm %s571_s4, %s242_s8  ;;  %s341_s22 = scalar_lea.hbm %s571_s4, 512 }
  0x51   : >> { %s339_s23 = scalar_lea.hbm %s92_s13, 32  ;;  %p342_p0 = scmp.lt.u32.totalorder %s92_s13, %s571_s4 }
  0x52   : >> { %p340_p13 = scmp.ne.s32.totalorder %s92_s13, %s339_s23  ;;  %p343_p1 = scmp.lt.u32.totalorder %s341_s22, %s339_s23 }
  0x53   : >> { %p345_p3 = scmp.lt.u32.totalorder %s339_s23, %s92_s13 }
  0x54   : >> { %p344_p2 = por %p343_p1, %p342_p0 }
  0x56   : >> { %p346_p4 = por %p345_p3, %p344_p2 }
  0x58   : >> { %p347_p5 = pnand %p346_p4, %p340_p13 }
  0x5a   : >> { %350 = shalt.err (!%p347_p5)  }
  0x5b   : >> { %s351_s26 = scalar_lea.vmem %s528_s7, 32  ;;  %s423_s24 = smov [#allocation3]  }
  0x5c   : >> { %p352_p6 = scmp.ne.s32.totalorder %s528_s7, %s351_s26  ;;  %s353_s25 = sshll.u32 %s423_s24, 4  ;;  %s354_s25 = int_to_ptr.vmem [resolvable:$false] %s353_s25 }
  0x5d   : >> { %s355_s27 = scalar_lea.vmem %s354_s25, 256  ;;  %p356_p7 = scmp.lt.s32.totalorder %s528_s7, %s354_s25 }
  0x5e   : >> { %p357_p8 = scmp.lt.s32.totalorder %s355_s27, %s351_s26 }
  0x60   : >> { %p358_p9 = por %p357_p8, %p356_p7 }
  0x62   : >> { %p359_p10 = pnand %p358_p9, %p352_p6 }
  0x64   : >> { %362 = shalt.err (!%p359_p10)  }
  0x65   : >> { %s424_s28 = smov 128   ;;  %s425_s30 = smov 1  }
  0x66   : >> { %103 = dma.hbm_to_vmem [thread:$0]  %s92_s13, 32, %s528_s7, [#allocation5 + $0x1], %s424_s28, %s424_s28, %s425_s30 }
  0x67   : >> { %s363_s6 = scalar_lea.hbm %s537_s20, 16  ;;  %p366_p12 = scmp.lt.u32.totalorder %s537_s20, %s570_s3 }
  0x68   : >> { %p364_p11 = scmp.ne.s32.totalorder %s537_s20, %s363_s6  ;;  %p367_p13 = scmp.lt.u32.totalorder %s317_s14, %s363_s6 }
  0x69   : >> { %p369_p1 = scmp.lt.u32.totalorder %s363_s6, %s537_s20 }
  0x6a   : >> { %p368_p0 = por %p367_p13, %p366_p12 }
  0x6c   : >> { %p370_p2 = por %p369_p1, %p368_p0 }
  0x6e   : >> { %p371_p3 = pnand %p370_p2, %p364_p11 }
  0x70   : >> { %374 = shalt.err (!%p371_p3)  }
  0x71   : >> { %s375_s15 = scalar_lea.vmem %s117_s29, 16  ;;  %s426_s7 = smov [#allocation4]  }
  0x72   : >> { %p376_p4 = scmp.ne.s32.totalorder %s117_s29, %s375_s15  ;;  %s377_s13 = sshll.u32 %s426_s7, 4  ;;  %s378_s13 = int_to_ptr.vmem [resolvable:$false] %s377_s13 }
  0x73   : >> { %s379_s18 = scalar_lea.vmem %s378_s13, 128  ;;  %p380_p5 = scmp.lt.s32.totalorder %s117_s29, %s378_s13 }
  0x74   : >> { %p381_p6 = scmp.lt.s32.totalorder %s379_s18, %s375_s15 }
  0x76   : >> { %p382_p7 = por %p381_p6, %p380_p5 }
  0x78   : >> { %p383_p8 = pnand %p382_p7, %p376_p4 }
  0x7a   : >> { %386 = shalt.err (!%p383_p8)  }
  0x7b   : >> { %119 = dma.hbm_to_vmem [thread:$0]  %s537_s20, 16, %s117_s29, [#allocation5 + $0x2] }
  0x7c   : >> { %s69_s17 = sadd.s32 1, %s413_s17  }
  0x7d   : >> { %p66_p9 = scmp.ge.s32.totalorder %s69_s17, 8  }
  0x7e   : > { %s415_s14 = smov (%p66_p9), 0  }
  0x7f   : > { %68 = sbr.rel (!%p66_p9) target bundleno = 47 (0x2f), region = 73 }
  0x86 LB: >> { %401 = dma.done.wait [#allocation5], 16  ;;  %s417_s14 = sphi %s415_s14, %s125_s14  }
  0x87   : >> { %402 = vsyncadd [#allocation5], 4294967280 }
  0x88   : >> { %403 = dma.done.wait [#allocation5 + $0x1], 32 }
  0x89   : >> { %404 = vsyncadd [#allocation5 + $0x1], 4294967264 }
  0x8a   : >> { %405 = dma.done.wait [#allocation5 + $0x2], 16 }
  0x8b   : >> { %406 = vsyncadd [#allocation5 + $0x2], 4294967280  ;;  %s125_s14 = sadd.s32 1, %s417_s14  }
  0x8c   : >> { %p122_p10 = scmp.ge.s32.totalorder %s125_s14, 8  }
  0x8d   : > { %v136_v0 = vld [vmem:[#allocation2] sm:$0xff] (%p122_p10)  ;;  %v137_v1 = vld [vmem:[#allocation4] sm:$0xff] (%p122_p10)  ;;  %v138_v2 = vld [vmem:[#allocation3] sm:$0xff] (%p122_p10)  ;;  %vm153_vm1 = vcmask (%p122_p10), 7168  }
  0x8e   : > { %124 = sbr.rel (!%p122_p10) target bundleno = 134 (0x86), region = 84  ;;  %v139_v3 = vld [vmem:[#allocation3 + $0x8] sm:$0xff] (%p122_p10)  ;;  %v140_v4 = vadd.f32 (%p122_p10), %v138_v2, %v136_v0 }
  0x8f   : > { %v141_v5 = vsub.f32 (%p122_p10), %v137_v1, %v139_v3 }
  0x91   : > { %v142_v6 = vsub.f32 (%p122_p10), %v140_v4, %v141_v5 }
  0x93   : > { %v143_v7 = vmul.f32 (%p122_p10), %v142_v6, %v142_v6 }
  0x95   : > { %144 = vadd.xlane.f32.xlu0 %v143_v7 }
 0x122   : > { %v145_v8 = vpop.xlane.xlu0 %144 }
 0x123   : > { %279 = vrsqrt.f32 %v145_v8  ;;  %vm148_vm0 = vcmp.eq.f32.partialorder %v145_v8, inf  ;;  %v151_v11 = vand.u32 2147483648, %v145_v8  ;;  %vm150_vm2 = vcmp.eq.f32.partialorder %v145_v8, 0.0 }
 0x12d   : > { %v280_v9 = vpop.eup %279 }
 0x12e   : > { %v147_v10 = vmul.f32 %v280_v9, %v145_v8 }
 0x130   : > { %v149_v12 = vsel %vm148_vm0, %v145_v8, %v147_v10 }
 0x131   : > { %v152_v13 = vsel %vm150_vm2, %v151_v11, %v149_v12 }
 0x132   : > { %154 = vst.msk [vmem:[%s487_s16] sm:$0xff] %vm153_vm1, %v152_v13 }
 0x133 PF: > { %s27_s2 = sadd.s32 1, %s409_s2  }
 0x134   : > { %p24_p11 = scmp.ge.s32.totalorder %s27_s2, 3  }
 0x136   :  { %26 = sbr.rel (!%p24_p11) target bundleno = 34 (0x22), region = 95 }
 0x13d   :  { %174 = vsyncmov [#allocation5] }
 0x140   :  { %s175_s11 = vpop.sfrf %174 }
 0x141   :  { %p247_p12 = scmp.ne.s32.totalorder %s175_s11, 0 }
 0x143   :  { %179 = shalt.err (%p247_p12)  }
 0x144   :  { %181 = vsyncmov [#allocation5 + $0x1] }
 0x147   :  { %s182_s17 = vpop.sfrf %181 }
 0x148   :  { %p248_p13 = scmp.ne.s32.totalorder %s182_s17, 0 }
 0x14a   :  { %186 = shalt.err (%p248_p13)  }
 0x14b   :  { %188 = vsyncmov [#allocation5 + $0x2] }
 0x14e   :  { %s189_s29 = vpop.sfrf %188 }
 0x14f   :  { %p249_p0 = scmp.ne.s32.totalorder %s189_s29, 0 }
 0x151   :  { %193 = shalt.err (%p249_p0)  }

</bundles_post_ra>
